<compile_context>
chip_gen: v7x
topology: tpu7x:2x2x1
jax: 0.10.0
libtpu: 0.0.40
codegen_flags: <defaults>
</compile_context>

<pallas_src>
import jax
import jax.numpy as jnp
from jax.experimental import pallas as pl
from jax.experimental.pallas import tpu as pltpu


def _round_up(x, m):
    return ((x + m - 1) // m) * m


def _graph_node_feature_kernel(ids_ref, tbl_ref, o_ref):
    # ids_ref: (RT, n_idx)   int32  indices into the stacked table
    # tbl_ref: (V_pad, H)    bf16   [atom; in_deg; out_deg; graph_token; zeros...]
    # o_ref  : (RT, H)       f32    per-row summed embeddings
    rt, n_idx = ids_ref.shape
    v = tbl_ref.shape[0]

    ids = ids_ref[...]
    # Hoisted 2-D iota; JAX does not CSE broadcast_in_dim, so build it once.
    iota = jax.lax.broadcasted_iota(jnp.int32, (rt, v), 1)

    # Short unrolled loop (n_idx = n_feat + 2 is tiny): pure VPU compare+add,
    # working set stays (RT, V) - no 3-D one-hot, no sublane reduce.
    counts = jnp.zeros((rt, v), jnp.float32)
    for j in range(n_idx):
        counts = counts + (ids[:, j:j + 1] == iota).astype(jnp.float32)

    # Counts are small exact integers -> bf16 cast is exact; feed the MXU bf16.
    counts = counts.astype(tbl_ref.dtype)

    # Fused embedding gather+sum (incl. graph token rows) as one MXU matmul.
    o_ref[...] = jnp.dot(counts, tbl_ref[...],
                         preferred_element_type=jnp.float32).astype(o_ref.dtype)


def build_stacked_table(atom_tbl, in_tbl, out_tbl, graph_token,
                        *, dtype=jnp.bfloat16):
    """Stack + pad the embedding tables ONCE, outside the per-call jitted path.

    Row layout: [atom (va) | in_degree (vi) | out_degree (vo) | graph_token (1) |
                 all-zero null row | zero padding to a multiple of 128].
    """
    va, hidden = atom_tbl.shape
    vi = in_tbl.shape[0]
    vo = out_tbl.shape[0]
    gtok_idx = va + vi + vo
    null_idx = gtok_idx + 1
    v_total = null_idx + 1
    v_pad = max(128, _round_up(v_total, 128))

    table = jnp.concatenate(
        [atom_tbl, in_tbl, out_tbl, graph_token.reshape(1, hidden)],
        axis=0).astype(dtype)
    table = jnp.pad(table, ((0, v_pad - (gtok_idx + 1)), (0, 0)))

    meta = dict(va=int(va), vi=int(vi), vo=int(vo), hidden=int(hidden),
                gtok_idx=int(gtok_idx), null_idx=int(null_idx), v_pad=int(v_pad))
    return table, meta


def make_graph_node_feature(meta, *, row_tile=256, table_dtype=jnp.bfloat16):
    """Returns a jitted forward(x, in_degree, out_degree, table).

    row_tile: per-generation knob -- 512-1024 on v5e/v6e (128 MiB VMEM),
    256-512 on v7x (64 MiB VMEM).  Large inputs keep a multi-step "parallel"
    row grid so v7x can shard tiles across both TensorCores.
    """
    va, vi = meta["va"], meta["vi"]
    gtok_idx, null_idx = meta["gtok_idx"], meta["null_idx"]
    v_pad, hidden = meta["v_pad"], meta["hidden"]
    tbl_bytes = jnp.dtype(table_dtype).itemsize

    def forward(x, in_degree, out_degree, table):
        n_graph, n_node, n_feat = x.shape
        n_idx = n_feat + 2
        rows = n_graph * (n_node + 1)          # graph-token row fused per graph

        # Node rows: atom ids + shifted degree ids.
        node_ids = jnp.concatenate(
            [x.astype(jnp.int32),
             in_degree[..., None].astype(jnp.int32) + va,
             out_degree[..., None].astype(jnp.int32) + va + vi],
            axis=-1)                                            # (G, N, n_idx)
        # Token rows: one hit on the graph_token row, rest hit the zero row, so
        # the kernel emits the token feature directly (no post-kernel concat).
        token_ids = jnp.full((n_graph, 1, n_idx), null_idx, jnp.int32)
        token_ids = token_ids.at[:, :, 0].set(gtok_idx)
        ids = jnp.concatenate([token_ids, node_ids], axis=1).reshape(rows, n_idx)

        # Row tiling: 8-aligned sublane tiles; small inputs collapse to 1 step.
        rt = min(_round_up(row_tile, 8), _round_up(rows, 8))
        padded = _round_up(rows, rt)
        if padded != rows:
            ids = jnp.pad(ids, ((0, padded - rows), (0, 0)),
                          constant_values=null_idx)    # padded rows -> zeros
        grid = (padded // rt,)

        # Explicit VMEM budget (v7x default scoped limit is conservative):
        # 2x ids block + 2x out block + 2x table (constant index_map, still
        # double-buffered by the pipeline) + counts temporaries, with headroom.
        blk_bytes = (2 * rt * n_idx * 4
                     + 2 * rt * hidden * 4
                     + 2 * v_pad * hidden * tbl_bytes
                     + rt * v_pad * (4 + tbl_bytes))
        vmem_limit = int(min(max(4 * blk_bytes + (4 << 20), 32 << 20), 56 << 20))

        # NOTE: hidden < 128 (demo) makes the output lane-sparse (masked
        # stores); production hidden (>=128) gives unmasked lane-dense stores.
        out_flat = pl.pallas_call(
            _graph_node_feature_kernel,
            out_shape=jax.ShapeDtypeStruct((padded, hidden), jnp.float32),
            grid=grid,
            in_specs=[
                pl.BlockSpec((rt, n_idx), lambda i: (i, 0)),
                # Constant index_map -> the table is DMA'd once per core.
                # TODO(synk): at production sizes (hidden~768, atom vocab ~5K)
                # single-buffer the table (pl.Buffered(1) / manual resident
                # copy) and replace the atom one-hot matmul with a
                # scalar-prefetch / DMA gather from an HBM-resident table.
                pl.BlockSpec((v_pad, hidden), lambda i: (0, 0)),
            ],
            out_specs=pl.BlockSpec((rt, hidden), lambda i: (i, 0)),
            compiler_params=pltpu.CompilerParams(
                dimension_semantics=("parallel",),
                vmem_limit_bytes=vmem_limit),
        )(ids, table)

        out = out_flat[:rows] if padded != rows else out_flat
        return out.reshape(n_graph, n_node + 1, hidden)

    return jax.jit(forward)


def _reference(x, in_degree, out_degree, atom_tbl, in_tbl, out_tbl, graph_token):
    n_graph = x.shape[0]
    nf = jnp.take(atom_tbl, x, axis=0).sum(axis=-2)
    nf = nf + jnp.take(in_tbl, in_degree, axis=0) + jnp.take(out_tbl, out_degree, axis=0)
    gtok = jnp.broadcast_to(graph_token[None, :, :],
                            (n_graph, 1, graph_token.shape[1]))
    return jnp.concatenate([gtok, nf], axis=1)


if __name__ == "__main__":
    # Module hyper-params (small, consistent with the forward pass).
    num_heads = 4          # unused in forward
    num_atoms = 63         # atom_encoder vocab = num_atoms + 1 = 64
    num_in_degree = 16
    num_out_degree = 16
    hidden_dim = 32
    n_layers = 2

    n_graph, n_node, n_feat = 2, 8, 4

    key = jax.random.PRNGKey(0)
    k_atom, k_in, k_out, k_gt, k_x, k_id, k_od = jax.random.split(key, 7)

    # init_params: every nn.Embedding weight ~ N(0, 0.02); padding_idx row is
    # also overwritten by normal_ in the original code, so no zeroing here.
    atom_tbl = 0.02 * jax.random.normal(k_atom, (num_atoms + 1, hidden_dim), jnp.float32)
    in_tbl = 0.02 * jax.random.normal(k_in, (num_in_degree, hidden_dim), jnp.float32)
    out_tbl = 0.02 * jax.random.normal(k_out, (num_out_degree, hidden_dim), jnp.float32)
    graph_token = 0.02 * jax.random.normal(k_gt, (1, hidden_dim), jnp.float32)

    x = jax.random.randint(k_x, (n_graph, n_node, n_feat), 0, num_atoms + 1, jnp.int32)
    in_degree = jax.random.randint(k_id, (n_graph, n_node), 0, num_in_degree, jnp.int32)
    out_degree = jax.random.randint(k_od, (n_graph, n_node), 0, num_out_degree, jnp.int32)

    # One-time table prep (outside the jitted per-call path).
    table, meta = build_stacked_table(atom_tbl, in_tbl, out_tbl, graph_token,
                                      dtype=jnp.bfloat16)
    fwd = make_graph_node_feature(meta, row_tile=256, table_dtype=jnp.bfloat16)

    out = jax.block_until_ready(fwd(x, in_degree, out_degree, table))
    assert out.shape == (n_graph, n_node + 1, hidden_dim), out.shape

    # Tight check vs. reference on the bf16-rounded weights the kernel consumes
    # (bf16 x small-int products are exact; accumulation is f32).
    bf = lambda t: t.astype(jnp.bfloat16).astype(jnp.float32)
    ref_bf16 = _reference(x, in_degree, out_degree,
                          bf(atom_tbl), bf(in_tbl), bf(out_tbl), bf(graph_token))
    assert jnp.allclose(out, ref_bf16, atol=1e-5, rtol=1e-5), "mismatch vs bf16-weight reference"

    # Loose check vs. the pure f32 reference (bf16 table rounding only).
    ref_f32 = _reference(x, in_degree, out_degree,
                         atom_tbl, in_tbl, out_tbl, graph_token)
    assert jnp.allclose(out, ref_f32, atol=3e-3, rtol=0.0), "mismatch vs f32 reference"

    print("KERNEL_OK")
</pallas_src>

<mosaic_0001>
module attributes {stable_mosaic.version = 11 : i64} {
  func.func @_graph_node_feature_kernel(%arg0: i32, %arg1: memref<24x6xi32, #tpu.memory_space<vmem>>, %arg2: memref<128x32xbf16, #tpu.memory_space<vmem>>, %arg3: memref<24x32xf32, #tpu.memory_space<vmem>>) attributes {dimension_semantics = [#tpu.dimension_semantics<parallel>], iteration_bounds = array<i64: 1>, scalar_prefetch = 0 : i64, scratch_operands = 0 : i64, tpu.core_type = #tpu.core_type<tc>, window_params = [{transform_indices = @transform_0, window_bounds = array<i64: 24, 6>}, {pipeline_mode = #tpu.pipeline_mode<synchronous>, transform_indices = @transform_1, window_bounds = array<i64: 128, 32>}, {transform_indices = @transform_2, window_bounds = array<i64: 24, 32>}]} {
    %c0 = arith.constant 0 : index
    %c0_0 = arith.constant 0 : index
    %0 = vector.load %arg1[%c0, %c0_0] : memref<24x6xi32, #tpu.memory_space<vmem>>, vector<24x6xi32>
    %1 = tpu.iota {dimensions = array<i32: 1>} : vector<24x128xi32>
    %cst = arith.constant 0.000000e+00 : f32
    %2 = vector.broadcast %cst : f32 to vector<24x128xf32>
    %3 = vector.extract_strided_slice %0 {offsets = [0, 0], sizes = [24, 1], strides = [1, 1]} : vector<24x6xi32> to vector<24x1xi32>
    %4 = vector.broadcast %3 : vector<24x1xi32> to vector<24x128xi32>
    %5 = arith.cmpi eq, %4, %1 : vector<24x128xi32>
    %6 = arith.extui %5 : vector<24x128xi1> to vector<24x128xi32>
    %7 = arith.sitofp %6 : vector<24x128xi32> to vector<24x128xf32>
    %8 = arith.addf %2, %7 : vector<24x128xf32>
    %9 = vector.extract_strided_slice %0 {offsets = [0, 1], sizes = [24, 1], strides = [1, 1]} : vector<24x6xi32> to vector<24x1xi32>
    %10 = vector.broadcast %9 : vector<24x1xi32> to vector<24x128xi32>
    %11 = arith.cmpi eq, %10, %1 : vector<24x128xi32>
    %12 = arith.extui %11 : vector<24x128xi1> to vector<24x128xi32>
    %13 = arith.sitofp %12 : vector<24x128xi32> to vector<24x128xf32>
    %14 = arith.addf %8, %13 : vector<24x128xf32>
    %15 = vector.extract_strided_slice %0 {offsets = [0, 2], sizes = [24, 1], strides = [1, 1]} : vector<24x6xi32> to vector<24x1xi32>
    %16 = vector.broadcast %15 : vector<24x1xi32> to vector<24x128xi32>
    %17 = arith.cmpi eq, %16, %1 : vector<24x128xi32>
    %18 = arith.extui %17 : vector<24x128xi1> to vector<24x128xi32>
    %19 = arith.sitofp %18 : vector<24x128xi32> to vector<24x128xf32>
    %20 = arith.addf %14, %19 : vector<24x128xf32>
    %21 = vector.extract_strided_slice %0 {offsets = [0, 3], sizes = [24, 1], strides = [1, 1]} : vector<24x6xi32> to vector<24x1xi32>
    %22 = vector.broadcast %21 : vector<24x1xi32> to vector<24x128xi32>
    %23 = arith.cmpi eq, %22, %1 : vector<24x128xi32>
    %24 = arith.extui %23 : vector<24x128xi1> to vector<24x128xi32>
    %25 = arith.sitofp %24 : vector<24x128xi32> to vector<24x128xf32>
    %26 = arith.addf %20, %25 : vector<24x128xf32>
    %27 = vector.extract_strided_slice %0 {offsets = [0, 4], sizes = [24, 1], strides = [1, 1]} : vector<24x6xi32> to vector<24x1xi32>
    %28 = vector.broadcast %27 : vector<24x1xi32> to vector<24x128xi32>
    %29 = arith.cmpi eq, %28, %1 : vector<24x128xi32>
    %30 = arith.extui %29 : vector<24x128xi1> to vector<24x128xi32>
    %31 = arith.sitofp %30 : vector<24x128xi32> to vector<24x128xf32>
    %32 = arith.addf %26, %31 : vector<24x128xf32>
    %33 = vector.extract_strided_slice %0 {offsets = [0, 5], sizes = [24, 1], strides = [1, 1]} : vector<24x6xi32> to vector<24x1xi32>
    %34 = vector.broadcast %33 : vector<24x1xi32> to vector<24x128xi32>
    %35 = arith.cmpi eq, %34, %1 : vector<24x128xi32>
    %36 = arith.extui %35 : vector<24x128xi1> to vector<24x128xi32>
    %37 = arith.sitofp %36 : vector<24x128xi32> to vector<24x128xf32>
    %38 = arith.addf %32, %37 : vector<24x128xf32>
    %39 = arith.truncf %38 : vector<24x128xf32> to vector<24x128xbf16>
    %c0_1 = arith.constant 0 : index
    %c0_2 = arith.constant 0 : index
    %40 = vector.load %arg2[%c0_1, %c0_2] : memref<128x32xbf16, #tpu.memory_space<vmem>>, vector<128x32xbf16>
    %cst_3 = arith.constant dense<0.000000e+00> : vector<24x32xf32>
    %41 = tpu.matmul %39, %40, %cst_3 {dimension_numbers = #tpu.dot_dimension_numbers<[1], [0], [0], [1], [0, 0, 1, 1], [], []>} : vector<24x128xbf16>, vector<128x32xbf16>, vector<24x32xf32> -> vector<24x32xf32>
    %c0_4 = arith.constant 0 : index
    %c0_5 = arith.constant 0 : index
    %42 = vector.load %arg3[%c0_4, %c0_5] : memref<24x32xf32, #tpu.memory_space<vmem>>, vector<24x32xf32>
    tpu.vector_store %arg3[%c0_4, %c0_5], %41 {strides = array<i32>} : memref<24x32xf32, #tpu.memory_space<vmem>>, vector<24x32xf32>,
    return
  }
  func.func @transform_0(%arg0: i32) -> (i32, i32) {
    %c0_i32 = arith.constant 0 : i32
    %c0_i32_0 = arith.constant 0 : i32
    return %arg0, %c0_i32 : i32, i32
  }
  func.func @transform_1(%arg0: i32) -> (i32, i32) {
    %c0_i32 = arith.constant 0 : i32
    %c0_i32_0 = arith.constant 0 : i32
    %c0_i32_1 = arith.constant 0 : i32
    return %c0_i32, %c0_i32_0 : i32, i32
  }
  func.func @transform_2(%arg0: i32) -> (i32, i32) {
    %c0_i32 = arith.constant 0 : i32
    %c0_i32_0 = arith.constant 0 : i32
    return %arg0, %c0_i32 : i32, i32
  }
}

</mosaic_0001>

<bundles_post_ra>
// kernel: forward.1
= control target key start
LH: loop header
LB: loop body
LE: loop exit
PB: predicated region body
PF: predicated region fallthrough
CT: control target
= control target key end

     0   :  { %v346_v0 = vmov 1   ;;  %v347_v1 = vmov 0   ;;  %v348_v5 = vmov 2   ;;  %v349_v7 = vmov 3   ;;  %s410_s0 = inlined_call_operand.vmem [shape: s32[24,6], index: 0, kind: input, shape index: {}]   ;;  %s411_s1 = inlined_call_operand.vmem [shape: bf16[128,32], index: 1, kind: input, shape index: {}]   ;;  %s412_s2 = inlined_call_operand.vmem [shape: f32[24,32], index: 2, kind: output, shape index: {}]  }
   0x1   :  { %329 = vset.pattern.permute.xlu1 %v346_v0  ;;  %328 = vset.pattern.permute.xlu0 %v347_v1  ;;  %v12_v2 = vld [vmem:[%s410_s0] sm:$0xff]  ;;  %v13_v3 = vld [vmem:[%s410_s0 + $0x8] sm:$0xff]  ;;  %v14_v4 = vld [vmem:[%s410_s0 + $0x10] sm:$0xff]  ;;  %v350_v9 = vmov 4   ;;  %v351_v11 = vmov 5   ;;  %v15_v26 = vlaneseq  ;;  %v352_v32 = vmov 0.0  }
   0x2   :  { %39 = vperm.xlu1 %329, %v12_v2   ;;  %18 = vperm.xlu0 %328, %v12_v2   ;;  %v338_v6 = vld [vmem:[%s411_s1] sm:$0xff]   ;;  %v339_v8 = vld [vmem:[%s411_s1 + $0x8] sm:$0xff]   ;;  %v340_v10 = vld [vmem:[%s411_s1 + $0x10] sm:$0xff]  }
   0x3   :  { %301 = vmatprep.subr.bf16.mxu0 %v338_v6  ;;  %v341_v12 = vld [vmem:[%s411_s1 + $0x18] sm:$0xff]   ;;  %v342_v13 = vld [vmem:[%s411_s1 + $0x20] sm:$0xff]   ;;  %v343_v14 = vld [vmem:[%s411_s1 + $0x28] sm:$0xff]   ;;  %v16_v29 = vand.u32 127, %v15_v26 }
   0x4   :  { %302 = vmatpush3.bf16.msra.mxu0 %v338_v6  ;;  %v344_v15 = vld [vmem:[%s411_s1 + $0x30] sm:$0xff]   ;;  %v345_v16 = vld [vmem:[%s411_s1 + $0x38] sm:$0xff]  }
   0x5   :  { %303 = vmatprep.subr.bf16.mxu0 %v339_v8 }
   0x6   :  { %42 = vperm.xlu1 %329, %v13_v3   ;;  %21 = vperm.xlu0 %328, %v13_v3  }
   0x8   :  { %304 = vmatpush3.bf16.msra.mxu0 %v339_v8 }
   0x9   :  { %305 = vmatprep.subr.bf16.mxu0 %v340_v10 }
   0xa   :  { %45 = vperm.xlu1 %329, %v14_v4   ;;  %24 = vperm.xlu0 %328, %v14_v4  }
   0xc   :  { %306 = vmatpush3.bf16.msra.mxu0 %v340_v10 }
   0xd   :  { %307 = vmatprep.subr.bf16.mxu0 %v341_v12 }
   0xe   :  { %331 = vset.pattern.permute.xlu1 %v348_v5  ;;  %330 = vset.pattern.permute.xlu0 %v348_v5 }
   0xf   :  { %63 = vperm.xlu1 %331, %v13_v3   ;;  %60 = vperm.xlu0 %330, %v12_v2  }
  0x10   :  { %308 = vmatpush3.bf16.msra.mxu0 %v341_v12 }
  0x11   :  { %309 = vmatprep.subr.bf16.mxu0 %v342_v13 }
  0x13   :  { %66 = vperm.xlu1 %331, %v14_v4   ;;  %332 = vset.pattern.permute.xlu0 %v349_v7 }
  0x14   :  { %81 = vperm.xlu0 %332, %v12_v2   ;;  %310 = vmatpush3.bf16.msra.mxu0 %v342_v13 }
  0x15   :  { %311 = vmatprep.subr.bf16.mxu0 %v343_v14 }
  0x17   :  { %333 = vset.pattern.permute.xlu1 %v349_v7 }
  0x18   :  { %84 = vperm.xlu1 %333, %v13_v3   ;;  %334 = vset.pattern.permute.xlu0 %v350_v9 }
  0x19   :  { %102 = vperm.xlu0 %334, %v12_v2   ;;  %312 = vmatpush3.bf16.msra.mxu0 %v343_v14 }
  0x1a   :  { %313 = vmatprep.subr.bf16.mxu0 %v344_v15 }
  0x1c   :  { %87 = vperm.xlu1 %333, %v14_v4  }
  0x1d   :  { %336 = vset.pattern.permute.xlu0 %v351_v11  ;;  %314 = vmatpush3.bf16.msra.mxu0 %v344_v15 }
  0x1e   :  { %123 = vperm.xlu0 %336, %v12_v2   ;;  %315 = vmatprep.subr.bf16.mxu0 %v345_v16 }
  0x20   :  { %335 = vset.pattern.permute.xlu1 %v350_v9 }
  0x21   :  { %105 = vperm.xlu1 %335, %v13_v3   ;;  %316 = vmatpush3.bf16.msra.mxu0 %v345_v16 }
  0x25   :  { %108 = vperm.xlu1 %335, %v14_v4  }
  0x29   :  { %337 = vset.pattern.permute.xlu1 %v351_v11 }
  0x2a   :  { %126 = vperm.xlu1 %337, %v13_v3  }
  0x2e   :  { %129 = vperm.xlu1 %337, %v14_v4  }
  0x81   :  { %v40_v17 = vpop.permute.xlu1 %39  ;;  %v19_v18 = vpop.permute.xlu0 %18 }
  0x82   :  { %vm47_vm0 = vcmp.eq.s32.totalorder %v40_v17, %v16_v29  ;;  %vm26_vm1 = vcmp.eq.s32.totalorder %v19_v18, %v16_v29 }
  0x83   :  { %v268_v33 = vsel %vm47_vm0, 1.0, %v352_v32  ;;  %v265_v34 = vsel %vm26_vm1, 1.0, %v352_v32 }
  0x84   :  { %v56_v38 = vadd.f32 %v268_v33, %v265_v34 }
  0x85   :  { %v43_v19 = vpop.permute.xlu1 %42  ;;  %v22_v20 = vpop.permute.xlu0 %21 }
  0x86   :  { %vm48_vm2 = vcmp.eq.s32.totalorder %v43_v19, %v16_v29  ;;  %vm27_vm3 = vcmp.eq.s32.totalorder %v22_v20, %v16_v29 }
  0x87   :  { %v269_v36 = vsel %vm48_vm2, 1.0, %v352_v32  ;;  %v266_v37 = vsel %vm27_vm3, 1.0, %v352_v32  ;;  %vm257_vm2 = vcmask 261120  }
  0x88   :  { %v57_v42 = vadd.f32 %v269_v36, %v266_v37 }
  0x89   :  { %v46_v21 = vpop.permute.xlu1 %45  ;;  %v25_v22 = vpop.permute.xlu0 %24 }
  0x8a   :  { %vm49_vm6 = vcmp.eq.s32.totalorder %v46_v21, %v16_v29  ;;  %vm28_vm7 = vcmp.eq.s32.totalorder %v25_v22, %v16_v29 }
  0x8b   :  { %v270_v44 = vsel %vm49_vm6, 1.0, %v352_v32  ;;  %v267_v45 = vsel %vm28_vm7, 1.0, %v352_v32 }
  0x8c   :  { %v58_v53 = vadd.f32 %v270_v44, %v267_v45 }
  0x8e   :  { %v64_v23 = vpop.permute.xlu1 %63  ;;  %v61_v24 = vpop.permute.xlu0 %60 }
  0x8f   :  { %vm69_vm4 = vcmp.eq.s32.totalorder %v64_v23, %v16_v29  ;;  %vm68_vm5 = vcmp.eq.s32.totalorder %v61_v24, %v16_v29 }
  0x90   :  { %v272_v39 = vsel %vm69_vm4, 1.0, %v352_v32  ;;  %v271_v40 = vsel %vm68_vm5, 1.0, %v352_v32 }
  0x91   :  { %v78_v48 = vadd.f32 %v272_v39, %v57_v42  ;;  %v77_v49 = vadd.f32 %v271_v40, %v56_v38 }
  0x92   :  { %v67_v25 = vpop.permute.xlu1 %66 }
  0x93   :  { %v82_v27 = vpop.permute.xlu0 %81  ;;  %vm70_vm10 = vcmp.eq.s32.totalorder %v67_v25, %v16_v29 }
  0x94   :  { %vm89_vm8 = vcmp.eq.s32.totalorder %v82_v27, %v16_v29  ;;  %v273_v50 = vsel %vm70_vm10, 1.0, %v352_v32 }
  0x95   :  { %v274_v46 = vsel %vm89_vm8, 1.0, %v352_v32  ;;  %v79_v59 = vadd.f32 %v273_v50, %v58_v53 }
  0x96   :  { %v98_v54 = vadd.f32 %v274_v46, %v77_v49 }
  0x97   :  { %v85_v28 = vpop.permute.xlu1 %84 }
  0x98   :  { %v103_v31 = vpop.permute.xlu0 %102  ;;  %vm90_vm9 = vcmp.eq.s32.totalorder %v85_v28, %v16_v29 }
  0x99   :  { %vm110_vm11 = vcmp.eq.s32.totalorder %v103_v31, %v16_v29  ;;  %v275_v47 = vsel %vm90_vm9, 1.0, %v352_v32 }
  0x9a   :  { %v277_v51 = vsel %vm110_vm11, 1.0, %v352_v32  ;;  %v99_v55 = vadd.f32 %v275_v47, %v78_v48 }
  0x9b   :  { %v88_v30 = vpop.permute.xlu1 %87  ;;  %v119_v60 = vadd.f32 %v277_v51, %v98_v54 }
  0x9c   :  { %vm91_vm13 = vcmp.eq.s32.totalorder %v88_v30, %v16_v29 }
  0x9d   :  { %v124_v41 = vpop.permute.xlu0 %123  ;;  %v276_v56 = vsel %vm91_vm13, 1.0, %v352_v32 }
  0x9e   :  { %vm131_vm14 = vcmp.eq.s32.totalorder %v124_v41, %v16_v29  ;;  %v100_v0 = vadd.f32 %v276_v56, %v79_v59 }
  0x9f   :  { %v280_v57 = vsel %vm131_vm14, 1.0, %v352_v32 }
  0xa0   :  { %v106_v35 = vpop.permute.xlu1 %105  ;;  %v140_v1 = vadd.f32 %v280_v57, %v119_v60 }
  0xa1   :  { %vm111_vm12 = vcmp.eq.s32.totalorder %v106_v35, %v16_v29 }
  0xa2   :  { %v278_v52 = vsel %vm111_vm12, 1.0, %v352_v32 }
  0xa3   :  { %v120_v61 = vadd.f32 %v278_v52, %v99_v55 }
  0xa4   :  { %v109_v43 = vpop.permute.xlu1 %108 }
  0xa5   :  { %vm112_vm15 = vcmp.eq.s32.totalorder %v109_v43, %v16_v29 }
  0xa6   :  { %v279_v62 = vsel %vm112_vm15, 1.0, %v352_v32 }
  0xa7   :  { %v121_v4 = vadd.f32 %v279_v62, %v100_v0 }
  0xa9   :  { %v127_v58 = vpop.permute.xlu1 %126 }
  0xaa   :  { %vm132_vm0 = vcmp.eq.s32.totalorder %v127_v58, %v16_v29 }
  0xab   :  { %v281_v63 = vsel %vm132_vm0, 1.0, %v352_v32 }
  0xac   :  { %v141_v2 = vadd.f32 %v281_v63, %v120_v61 }
  0xad   :  { %v130_v3 = vpop.permute.xlu1 %129 }
  0xae   :  { %vm133_vm1 = vcmp.eq.s32.totalorder %v130_v3, %v16_v29  ;;  %v143_v5 = vpack.c.bf16 %v141_v2, %v140_v1 }
  0xaf   :  { %v282_v6 = vsel %vm133_vm1, 1.0, %v352_v32 }
  0xb0   :  { %v142_v7 = vadd.f32 %v282_v6, %v121_v4  ;;  %317 = vmatprep.mubr.bf16.mxu0 %v143_v5 }
  0xb2   :  { %v144_v8 = vpack.c.bf16 %v142_v7, %v142_v7 }
  0xb4   :  { %318 = vmatmul.mubr.bf16.vlgmr.msra.gmra.mrb[0].mxu0 %v144_v8 }
 0x187   :  { %v319_v9 = vpop.f32.mrb[0].mxu0 }
 0x188   :  { %260 = vst.msk [vmem:[%s412_s2 + $0x10] sm:$0xff] %vm257_vm2, %v319_v9  ;;  %v243_v10 = vpop.f32.mrb[1].mxu0 }
 0x189   :  { %258 = vst.msk [vmem:[%s412_s2] sm:$0xff] %vm257_vm2, %v243_v10  ;;  %v320_v11 = vpop.f32.mrb[2].mxu0 }
 0x18a   :  { %v246_v12 = vpop.f32.mrb[3].mxu0 }
 0x18b   :  { %259 = vst.msk [vmem:[%s412_s2 + $0x8] sm:$0xff] %vm257_vm2, %v246_v12 }

</bundles_post_ra>
